<compile_context>
chip_gen: v5e
topology: v5e:2x2
jax: 0.10.0
libtpu: 0.0.40
codegen_flags: <defaults>
</compile_context>

<pallas_src>
import functools

import jax
import jax.numpy as jnp
from jax.experimental import pallas as pl
from jax.experimental.pallas import tpu as pltpu


def _round_up(x, m):
    return ((x + m - 1) // m) * m


# ---------------------------------------------------------------------------
# Phase 1: causal-edge accumulation.
#   causal = (1/B) * sum over batch tiles of actions_tile^T @ rewards_tile
# The output block index is constant across the grid, so the output block is
# resident in VMEM and doubles as the accumulator (P3: pl.when init/finalize).
# ---------------------------------------------------------------------------
def _causal_kernel(actions_ref, rewards_ref, causal_ref, *, inv_batch):
    @pl.when(pl.program_id(0) == 0)
    def _():
        causal_ref[...] = jnp.zeros_like(causal_ref)

    causal_ref[...] += jax.lax.dot_general(
        actions_ref[...], rewards_ref[...],
        (((0,), (0,)), ((), ())),
        preferred_element_type=jnp.float32,
    )

    @pl.when(pl.program_id(0) == pl.num_programs(0) - 1)
    def _():
        causal_ref[...] = causal_ref[...] * jnp.float32(inv_batch)


# ---------------------------------------------------------------------------
# Phase 2: per batch tile
#   policy = masked_softmax(states @ W + b)   over the valid action lanes
#   out    = masked_softmax(policy @ causal)  over the valid reward lanes
# Feature dims are padded to 128 lanes (lane-dense stores); padding lanes are
# masked to a large negative value before each softmax.
# ---------------------------------------------------------------------------
def _policy_explain_kernel(states_ref, w_ref, b_ref, causal_ref, out_ref, *,
                           num_actions, num_rewards):
    # --- ModelBasedRL.learn_policy: linear head + softmax (Categorical) ------
    logits = jnp.dot(states_ref[...], w_ref[...],
                     preferred_element_type=jnp.float32) + b_ref[...]
    if num_actions != logits.shape[-1]:
        a_lane = jax.lax.broadcasted_iota(jnp.int32, logits.shape, 1)
        logits = jnp.where(a_lane < num_actions, logits, -1e30)
    m = jnp.max(logits, axis=-1, keepdims=True)
    e = jnp.exp(logits - m)
    policy = e * pl.reciprocal(jnp.sum(e, axis=-1, keepdims=True), approx=True)

    # --- BayesianNetwork.explain(policy): attribute policy mass to rewards ---
    expl = jnp.dot(policy, causal_ref[...], preferred_element_type=jnp.float32)
    if num_rewards != expl.shape[-1]:
        r_lane = jax.lax.broadcasted_iota(jnp.int32, expl.shape, 1)
        expl = jnp.where(r_lane < num_rewards, expl, -1e30)
    em = jnp.max(expl, axis=-1, keepdims=True)
    ee = jnp.exp(expl - em)
    out_ref[...] = ee * pl.reciprocal(jnp.sum(ee, axis=-1, keepdims=True),
                                      approx=True)


def _pad2(x, rows, cols, dtype=None):
    r, c = x.shape
    x = jnp.pad(x, ((0, rows - r), (0, cols - c)))
    return x if dtype is None else x.astype(dtype)


def agi_explainable_rl_forward(states, actions, rewards, w_pi, b_pi, *,
                               batch_tile=512):
    B, S = states.shape
    _, A = actions.shape
    _, R = rewards.shape
    assert w_pi.shape == (S, A) and b_pi.shape == (1, A)

    # Batch tile (multiple of 16 for bf16 sublane packing); pad batch up to it.
    bt = _round_up(min(batch_tile, B), 16)
    B_pad = _round_up(B, bt)
    n_tiles = B_pad // bt

    # Lane-dense padded feature dims.
    A_pad = _round_up(A, 128)
    R_pad = _round_up(R, 128)

    vmem_limit = 32 * 1024 * 1024  # valid budget on v5e/v6e/v7x

    # Padded / cast inputs (zeros in padded batch rows contribute nothing to
    # the causal reduction; padded feature lanes are masked in-kernel).
    states_p = _pad2(states, B_pad, S, jnp.bfloat16)     # bf16: halve HBM bytes
    actions_p = _pad2(actions, B_pad, A)                 # keep fp32 for reduction
    rewards_p = _pad2(rewards, B_pad, R)
    w_p = _pad2(w_pi, S, A_pad, jnp.bfloat16)
    b_p = _pad2(b_pi, 1, A_pad)

    # ---------------- Phase 1: global causal reduction over batch ------------
    causal = pl.pallas_call(
        functools.partial(_causal_kernel, inv_batch=1.0 / B),
        out_shape=jax.ShapeDtypeStruct((A, R), jnp.float32),
        grid=(n_tiles,),
        in_specs=[
            pl.BlockSpec((bt, A), lambda i: (i, 0)),
            pl.BlockSpec((bt, R), lambda i: (i, 0)),
        ],
        out_specs=pl.BlockSpec((A, R), lambda i: (0, 0)),
        compiler_params=pltpu.CompilerParams(
            dimension_semantics=("arbitrary",),   # output revisited (reduction)
            vmem_limit_bytes=vmem_limit,
        ),
    )(actions_p, rewards_p)

    # Tiny pad of the (A, R) edge matrix so phase 2 stays lane-dense.
    causal_p = jnp.pad(causal, ((0, A_pad - A), (0, R_pad - R)))

    # ---------------- Phase 2: policy + explanation per batch tile -----------
    out_padded = pl.pallas_call(
        functools.partial(_policy_explain_kernel,
                          num_actions=A, num_rewards=R),
        out_shape=jax.ShapeDtypeStruct((B_pad, R_pad), jnp.float32),
        grid=(n_tiles,),
        in_specs=[
            pl.BlockSpec((bt, S), lambda i: (i, 0)),
            pl.BlockSpec((S, A_pad), lambda i: (0, 0)),
            pl.BlockSpec((1, A_pad), lambda i: (0, 0)),
            pl.BlockSpec((A_pad, R_pad), lambda i: (0, 0)),
        ],
        out_specs=pl.BlockSpec((bt, R_pad), lambda i: (i, 0)),
        compiler_params=pltpu.CompilerParams(
            dimension_semantics=("parallel",),    # shard batch tiles on v7x TCs
            vmem_limit_bytes=vmem_limit,
        ),
    )(states_p, w_p, b_p, causal_p)

    return out_padded[:B, :R]


def _reference(states, actions, rewards, w_pi, b_pi):
    logits = states @ w_pi + b_pi
    policy = jax.nn.softmax(logits, axis=-1)
    causal = (actions.T @ rewards) / actions.shape[0]
    expl = policy @ causal
    return jax.nn.softmax(expl, axis=-1)


if __name__ == "__main__":
    # Small shapes implied by (num_states, num_actions, num_rewards); batch is
    # non-multiple of the tile to exercise batch padding + the multi-tile grid.
    B, NUM_STATES, NUM_ACTIONS, NUM_REWARDS = 300, 32, 16, 8

    key = jax.random.PRNGKey(0)
    k_s, k_a, k_r, k_w = jax.random.split(key, 4)

    states = jax.random.normal(k_s, (B, NUM_STATES), dtype=jnp.float32)
    act_idx = jax.random.randint(k_a, (B,), 0, NUM_ACTIONS)
    actions = jax.nn.one_hot(act_idx, NUM_ACTIONS, dtype=jnp.float32)
    rewards = jax.random.uniform(k_r, (B, NUM_REWARDS), dtype=jnp.float32)

    w_pi = (jax.random.normal(k_w, (NUM_STATES, NUM_ACTIONS), dtype=jnp.float32)
            * (1.0 / jnp.sqrt(NUM_STATES)))
    b_pi = jnp.zeros((1, NUM_ACTIONS), dtype=jnp.float32)

    out = agi_explainable_rl_forward(states, actions, rewards, w_pi, b_pi,
                                     batch_tile=128)
    out = jax.block_until_ready(out)

    ref = _reference(states, actions, rewards, w_pi, b_pi)
    assert out.shape == (B, NUM_REWARDS)
    # Tolerance relaxed for bf16 matmul operands + approx (EUP) reciprocals.
    assert jnp.allclose(out, ref, atol=5e-3, rtol=2e-2), "mismatch vs reference"

    print("KERNEL_OK")
</pallas_src>

<mosaic_0001>
module attributes {stable_mosaic.version = 11 : i64} {
  func.func @_causal_kernel(%arg0: i32, %arg1: memref<128x16xf32, #tpu.memory_space<vmem>>, %arg2: memref<128x8xf32, #tpu.memory_space<vmem>>, %arg3: memref<16x8xf32, #tpu.memory_space<vmem>>) attributes {dimension_semantics = [#tpu.dimension_semantics<arbitrary>], iteration_bounds = array<i64: 3>, scalar_prefetch = 0 : i64, scratch_operands = 0 : i64, tpu.core_type = #tpu.core_type<tc>, window_params = [{transform_indices = @transform_0, window_bounds = array<i64: 128, 16>}, {transform_indices = @transform_1, window_bounds = array<i64: 128, 8>}, {pipeline_mode = #tpu.pipeline_mode<synchronous>, transform_indices = @transform_2, window_bounds = array<i64: 16, 8>}]} {
    %c0_i32 = arith.constant 0 : i32
    %0 = arith.cmpi eq, %arg0, %c0_i32 : i32
    %1 = arith.extui %0 : i1 to i32
    %c0_i32_0 = arith.constant 0 : i32
    %2 = arith.cmpi ne, %1, %c0_i32_0 : i32
    scf.if %2 {
      %cst_9 = arith.constant 0.000000e+00 : f32
      %12 = vector.broadcast %cst_9 : f32 to vector<16x8xf32>
      %c0_10 = arith.constant 0 : index
      %c0_11 = arith.constant 0 : index
      %13 = vector.load %arg3[%c0_10, %c0_11] : memref<16x8xf32, #tpu.memory_space<vmem>>, vector<16x8xf32>
      tpu.vector_store %arg3[%c0_10, %c0_11], %12 {strides = array<i32>} : memref<16x8xf32, #tpu.memory_space<vmem>>, vector<16x8xf32>,
    } else {
    }
    %c0 = arith.constant 0 : index
    %c0_1 = arith.constant 0 : index
    %3 = vector.load %arg3[%c0, %c0_1] : memref<16x8xf32, #tpu.memory_space<vmem>>, vector<16x8xf32>
    %c0_2 = arith.constant 0 : index
    %c0_3 = arith.constant 0 : index
    %4 = vector.load %arg1[%c0_2, %c0_3] : memref<128x16xf32, #tpu.memory_space<vmem>>, vector<128x16xf32>
    %c0_4 = arith.constant 0 : index
    %c0_5 = arith.constant 0 : index
    %5 = vector.load %arg2[%c0_4, %c0_5] : memref<128x8xf32, #tpu.memory_space<vmem>>, vector<128x8xf32>
    %cst = arith.constant dense<0.000000e+00> : vector<16x8xf32>
    %6 = tpu.matmul %4, %5, %cst {dimension_numbers = #tpu.dot_dimension_numbers<[0], [0], [1], [1], [0, 1, 1, 1], [], []>} : vector<128x16xf32>, vector<128x8xf32>, vector<16x8xf32> -> vector<16x8xf32>
    %7 = arith.addf %3, %6 : vector<16x8xf32>
    %c0_6 = arith.constant 0 : index
    %c0_7 = arith.constant 0 : index
    %8 = vector.load %arg3[%c0_6, %c0_7] : memref<16x8xf32, #tpu.memory_space<vmem>>, vector<16x8xf32>
    tpu.vector_store %arg3[%c0_6, %c0_7], %7 {strides = array<i32>} : memref<16x8xf32, #tpu.memory_space<vmem>>, vector<16x8xf32>,
    %c2_i32 = arith.constant 2 : i32
    %9 = arith.cmpi eq, %arg0, %c2_i32 : i32
    %10 = arith.extui %9 : i1 to i32
    %c0_i32_8 = arith.constant 0 : i32
    %11 = arith.cmpi ne, %10, %c0_i32_8 : i32
    scf.if %11 {
      %c0_9 = arith.constant 0 : index
      %c0_10 = arith.constant 0 : index
      %12 = vector.load %arg3[%c0_9, %c0_10] : memref<16x8xf32, #tpu.memory_space<vmem>>, vector<16x8xf32>
      %cst_11 = arith.constant 0.00333333341 : f32
      %13 = vector.broadcast %cst_11 : f32 to vector<16x8xf32>
      %14 = arith.mulf %12, %13 : vector<16x8xf32>
      %c0_12 = arith.constant 0 : index
      %c0_13 = arith.constant 0 : index
      %15 = vector.load %arg3[%c0_12, %c0_13] : memref<16x8xf32, #tpu.memory_space<vmem>>, vector<16x8xf32>
      tpu.vector_store %arg3[%c0_12, %c0_13], %14 {strides = array<i32>} : memref<16x8xf32, #tpu.memory_space<vmem>>, vector<16x8xf32>,
    } else {
    }
    return
  }
  func.func @transform_0(%arg0: i32) -> (i32, i32) {
    %c0_i32 = arith.constant 0 : i32
    %c0_i32_0 = arith.constant 0 : i32
    return %arg0, %c0_i32 : i32, i32
  }
  func.func @transform_1(%arg0: i32) -> (i32, i32) {
    %c0_i32 = arith.constant 0 : i32
    %c0_i32_0 = arith.constant 0 : i32
    return %arg0, %c0_i32 : i32, i32
  }
  func.func @transform_2(%arg0: i32) -> (i32, i32) {
    %c0_i32 = arith.constant 0 : i32
    %c0_i32_0 = arith.constant 0 : i32
    %c0_i32_1 = arith.constant 0 : i32
    return %c0_i32, %c0_i32_0 : i32, i32
  }
}

</mosaic_0001>

<bundles_post_ra>
// kernel: tpu_custom_call.1
= control target key start
LH: loop header
LB: loop body
LE: loop exit
PB: predicated region body
PF: predicated region fallthrough
CT: control target
= control target key end

     0   :  { %s365_s9 = smov 0   ;;  %s453_s0 = inlined_call_operand.vmem [shape: f32[384,16], index: 0, kind: input, shape index: {}]   ;;  %s454_s1 = inlined_call_operand.vmem [shape: f32[384,8], index: 1, kind: input, shape index: {}]   ;;  %s455_s2 = inlined_call_operand.vmem [shape: f32[16,8], index: 2, kind: output, shape index: {}]  }
   0x1 LB: > { %s371_s10 = sadd.s32 4294967295, %s347_s9   ;;  %p307_p0 = scmp.ge.s32.totalorder %s347_s9, 1  ;;  %s347_s9 = sphi %s365_s9, %s12_s9  }
   0x2   : > { %p119_p1 = scmp.lt.s32.totalorder %s347_s9, 4 }
   0x4   : > { %p120_p2 = pnand %p307_p0, %p119_p1 }
   0x5   : > { %s308_s11 = sshll.u32 (!%p120_p2), %s371_s10, 4  ;;  %p312_p4 = scmp.ne.s32.totalorder (!%p120_p2), %s371_s10, 0 }
   0x6   : > { %123 = sbr.rel (%p120_p2) target bundleno = 332 (0x14c), region = 28  ;;  %p142_p3 = scmp.lt.s32.totalorder (!%p120_p2), %s308_s11, 47 }
   0xb   : > { %s457_s11 = smov (!%p142_p3, %s308_s11), 47  ;;  %156 = sbr.rel (%p312_p4) target bundleno = 19 (0x13), region = 32 }
   0xc   : > { %s309_s12 = sshll.u32 %s457_s11, 3 }
   0xd   : > { %s379_s15 = scalar_lea.vmem %s453_s0, %s309_s12  ;;  %s384_s18 = scalar_lea.vmem %s454_s1, %s309_s12 }
  0x10   : > { %vm157_vm0 = vcmask 64512   ;;  %v349_v0 = vmov 0.0  }
  0x11   : > { %158 = vst.msk [vmem:[%s455_s2] sm:$0xff] %vm157_vm0, %v349_v0 }
  0x12   : > { %159 = vst.msk [vmem:[%s455_s2 + $0x8] sm:$0xff] %vm157_vm0, %v349_v0 }
  0x13 PF: > { %v162_v1 = vld [vmem:[%s379_s15] sm:$0xff]  ;;  %v163_v2 = vld [vmem:[%s379_s15 + $0x8] sm:$0xff]  ;;  %v164_v3 = vld [vmem:[%s379_s15 + $0x10] sm:$0xff]  ;;  %vm251_vm1 = vcmask 64512   ;;  %p313_p5 = scmp.ne.s32.totalorder %s371_s10, 2 }
  0x14   : > { %194 = vxpose.xlu0.b32.start [1/16] (narrow) %v162_v1, 16  ;;  %v165_v4 = vld [vmem:[%s379_s15 + $0x18] sm:$0xff]  ;;  %v166_v5 = vld [vmem:[%s379_s15 + $0x20] sm:$0xff]  ;;  %v167_v6 = vld [vmem:[%s379_s15 + $0x28] sm:$0xff] }
  0x15   : > { %v168_v7 = vld [vmem:[%s379_s15 + $0x30] sm:$0xff]  ;;  %v169_v8 = vld [vmem:[%s379_s15 + $0x38] sm:$0xff]  ;;  %v170_v9 = vld [vmem:[%s379_s15 + $0x40] sm:$0xff] }
  0x16   : > { %v171_v10 = vld [vmem:[%s379_s15 + $0x48] sm:$0xff]  ;;  %v172_v11 = vld [vmem:[%s379_s15 + $0x50] sm:$0xff]  ;;  %v173_v12 = vld [vmem:[%s379_s15 + $0x58] sm:$0xff] }
  0x17   : > { %v193_v13 = vld [vmem:[%s384_s18 + $0x78] sm:$0xff]  ;;  %v192_v14 = vld [vmem:[%s384_s18 + $0x70] sm:$0xff]  ;;  %v191_v15 = vld [vmem:[%s384_s18 + $0x68] sm:$0xff] }
  0x18   : > { %226 = vmatpush.msra.mxu0 %v193_v13  ;;  %316 = vmatpush.msra.mxu1 %v193_v13  ;;  %v190_v16 = vld [vmem:[%s384_s18 + $0x60] sm:$0xff]  ;;  %v189_v18 = vld [vmem:[%s384_s18 + $0x58] sm:$0xff]  ;;  %v188_v19 = vld [vmem:[%s384_s18 + $0x50] sm:$0xff] }
  0x19   : > { %v174_v17 = vld [vmem:[%s379_s15 + $0x60] sm:$0xff]  ;;  %v187_v20 = vld [vmem:[%s384_s18 + $0x48] sm:$0xff]  ;;  %v185_v23 = vld [vmem:[%s384_s18 + $0x38] sm:$0xff] }
  0x1a   : > { %227 = vmatpush.msra.mxu0 %v192_v14  ;;  %317 = vmatpush.msra.mxu1 %v192_v14  ;;  %v186_v21 = vld [vmem:[%s384_s18 + $0x40] sm:$0xff]  ;;  %v175_v22 = vld [vmem:[%s379_s15 + $0x68] sm:$0xff]  ;;  %v184_v24 = vld [vmem:[%s384_s18 + $0x30] sm:$0xff] }
  0x1b   : > { %v183_v25 = vld [vmem:[%s384_s18 + $0x28] sm:$0xff]  ;;  %v182_v26 = vld [vmem:[%s384_s18 + $0x20] sm:$0xff]  ;;  %v176_v27 = vld [vmem:[%s379_s15 + $0x70] sm:$0xff] }
  0x1c   : > { %195 = vxpose.xlu0.b32.cont [2/16] (narrow) %v163_v2, 16  ;;  %228 = vmatpush.msra.mxu0 %v191_v15  ;;  %v181_v28 = vld [vmem:[%s384_s18 + $0x18] sm:$0xff]  ;;  %v180_v29 = vld [vmem:[%s384_s18 + $0x10] sm:$0xff]  ;;  %v179_v30 = vld [vmem:[%s384_s18 + $0x8] sm:$0xff] }
  0x1d   : > { %318 = vmatpush.msra.mxu1 %v191_v15  ;;  %v177_v31 = vld [vmem:[%s379_s15 + $0x78] sm:$0xff]  ;;  %v178_v32 = vld [vmem:[%s384_s18] sm:$0xff]  ;;  %v161_v38 = vld [vmem:[%s455_s2 + $0x8] sm:$0xff] }
  0x1e   : > { %229 = vmatpush.msra.mxu0 %v190_v16  ;;  %v160_v35 = vld [vmem:[%s455_s2] sm:$0xff] }
  0x1f   : > { %319 = vmatpush.msra.mxu1 %v190_v16 }
  0x20   : > { %230 = vmatpush.msra.mxu0 %v189_v18 }
  0x21   : > { %320 = vmatpush.msra.mxu1 %v189_v18 }
  0x22   : > { %231 = vmatpush.msra.mxu0 %v188_v19 }
  0x23   : > { %321 = vmatpush.msra.mxu1 %v188_v19 }
  0x24   : > { %196 = vxpose.xlu0.b32.cont [3/16] (narrow) %v164_v3, 16  ;;  %232 = vmatpush.msra.mxu0 %v187_v20 }
  0x25   : > { %322 = vmatpush.msra.mxu1 %v187_v20 }
  0x26   : > { %233 = vmatpush.msra.mxu0 %v186_v21 }
  0x27   : > { %323 = vmatpush.msra.mxu1 %v186_v21 }
  0x28   : > { %234 = vmatpush.msra.mxu0 %v185_v23 }
  0x29   : > { %324 = vmatpush.msra.mxu1 %v185_v23 }
  0x2a   : > { %235 = vmatpush.msra.mxu0 %v184_v24 }
  0x2b   : > { %325 = vmatpush.msra.mxu1 %v184_v24 }
  0x2c   : > { %197 = vxpose.xlu0.b32.cont [4/16] (narrow) %v165_v4, 16  ;;  %236 = vmatpush.msra.mxu0 %v183_v25 }
  0x2d   : > { %326 = vmatpush.msra.mxu1 %v183_v25 }
  0x2e   : > { %237 = vmatpush.msra.mxu0 %v182_v26 }
  0x2f   : > { %327 = vmatpush.msra.mxu1 %v182_v26 }
  0x30   : > { %238 = vmatpush.msra.mxu0 %v181_v28 }
  0x31   : > { %328 = vmatpush.msra.mxu1 %v181_v28 }
  0x32   : > { %239 = vmatpush.msra.mxu0 %v180_v29 }
  0x33   : > { %329 = vmatpush.msra.mxu1 %v180_v29 }
  0x34   : > { %198 = vxpose.xlu0.b32.cont [5/16] (narrow) %v166_v5, 16  ;;  %240 = vmatpush.msra.mxu0 %v179_v30 }
  0x35   : > { %330 = vmatpush.msra.mxu1 %v179_v30 }
  0x36   : > { %241 = vmatpush.msra.mxu0 %v178_v32 }
  0x37   : > { %331 = vmatpush.msra.mxu1 %v178_v32 }
  0x3c   : > { %199 = vxpose.xlu0.b32.cont [6/16] (narrow) %v167_v6, 16 }
  0x44   : > { %200 = vxpose.xlu0.b32.cont [7/16] (narrow) %v168_v7, 16 }
  0x4c   : > { %201 = vxpose.xlu0.b32.cont [8/16] (narrow) %v169_v8, 16 }
  0x54   : > { %202 = vxpose.xlu0.b32.cont [9/16] (narrow) %v170_v9, 16 }
  0x5c   : > { %203 = vxpose.xlu0.b32.cont [10/16] (narrow) %v171_v10, 16 }
  0x64   : > { %204 = vxpose.xlu0.b32.cont [11/16] (narrow) %v172_v11, 16 }
  0x6c   : > { %205 = vxpose.xlu0.b32.cont [12/16] (narrow) %v173_v12, 16 }
  0x74   : > { %206 = vxpose.xlu0.b32.cont [13/16] (narrow) %v174_v17, 16 }
  0x7c   : > { %207 = vxpose.xlu0.b32.cont [14/16] (narrow) %v175_v22, 16 }
  0x84   : > { %208 = vxpose.xlu0.b32.cont [15/16] (narrow) %v176_v27, 16 }
  0x8c   : > { %209 = vxpose.xlu0.b32.end [16/16] (narrow) %v177_v31, 16 }
  0xb8   : > { %v210_v33 = vpop.trf.xlu0 }
  0xb9   : > { %242 = vmatmul.f32.vlgmr.msra.gmra.mxu0 %v210_v33 }
  0xc0   : > { %v211_v34 = vpop.trf.xlu0 }
  0xc1   : > { %245 = vmatmul.f32.vlgmr.msra.gmra.mxu1 %v211_v34 }
 0x136   : > { %v243_v36 = vpop.f32.mrf.mxu0 }
 0x137   : > { %v249_v37 = vadd.f32 %v243_v36, %v160_v35 }
 0x139   : > { %252 = vst.msk [vmem:[%s455_s2] sm:$0xff] %vm251_vm1, %v249_v37 }
 0x13d   : > { %257 = sbr.rel (%p313_p5) target bundleno = 332 (0x14c), region = 36 }
 0x13e   : > { %v246_v39 = vpop.f32.mrf.mxu1 }
 0x13f   : > { %v250_v40 = vadd.f32 %v246_v39, %v161_v38 }
 0x141   : > { %253 = vst.msk [vmem:[%s455_s2 + $0x8] sm:$0xff] %vm251_vm1, %v250_v40 }
 0x142   : > { %v258_v41 = vld [vmem:[%s455_s2] sm:$0xff] }
 0x143   : > { %v260_v43 = vmul.f32 0.0033333334, %v258_v41 }
 0x145   : > { %262 = vst.msk [vmem:[%s455_s2] sm:$0xff] %vm251_vm1, %v260_v43 }
 0x148   : > { %v259_v42 = vld [vmem:[%s455_s2 + $0x8] sm:$0xff] }
 0x149   : > { %v261_v44 = vmul.f32 0.0033333334, %v259_v42 }
 0x14b   : > { %263 = vst.msk [vmem:[%s455_s2 + $0x8] sm:$0xff] %vm251_vm1, %v261_v44 }
 0x14c PF: > { %s12_s9 = sadd.s32 1, %s347_s9  }
 0x14d   : > { %p9_p6 = scmp.ge.s32.totalorder %s12_s9, 5  }
 0x14f   :  { %11 = sbr.rel (!%p9_p6) target bundleno = 1 (0x1), region = 65 }

</bundles_post_ra>
